<compile_context>
chip_gen: v7x
topology: tpu7x:2x2x1
jax: 0.10.0
libtpu: 0.0.40
codegen_flags: <defaults>
</compile_context>

<pallas_src>
import jax
import jax.numpy as jnp
from jax.experimental import pallas as pl
from jax.experimental.pallas import tpu as pltpu


def _keep_half_mask(shape, seed_u32, row_offset, salt: int):
    """Deterministic Bernoulli(0.5) keep-mask from a counter-based hash.

    Pure integer VPU ops -> lowers on real TPUs *and* in interpret mode
    (unlike pltpu.prng_seed / prng_random_bits).
    """
    rows = (jax.lax.broadcasted_iota(jnp.int32, shape, 0) + row_offset).astype(jnp.uint32)
    cols = jax.lax.broadcasted_iota(jnp.int32, shape, 1).astype(jnp.uint32)
    v = rows * jnp.uint32(0x9E3779B1)
    v = v + cols * jnp.uint32(0x85EBCA77)
    v = v + seed_u32 * jnp.uint32(0x27D4EB2F)
    v = v + jnp.uint32((salt * 0x165667B1) & 0xFFFFFFFF)
    # murmur3-style avalanche (xorshift-multiply finalizer)
    v = v ^ (v >> 16)
    v = v * jnp.uint32(0x7FEB352D)
    v = v ^ (v >> 15)
    v = v * jnp.uint32(0x846CA68B)
    v = v ^ (v >> 16)
    return v < jnp.uint32(0x80000000)  # MSB test -> keep prob 0.5


def _prenet_fused_kernel(seed_ref, x_ref, w1_ref, w2_ref, o_ref, h_ref):
    """Fused: (Linear -> ReLU -> dropout(0.5)) x 2, intermediate kept in VMEM."""
    tm = x_ref.shape[0]
    seed = seed_ref[0].astype(jnp.uint32)
    row_off = pl.program_id(0) * tm  # global row offset -> distinct mask per tile

    # ---- layer 1 ----
    y1 = jnp.dot(x_ref[...].astype(jnp.bfloat16), w1_ref[...],
                 preferred_element_type=jnp.float32)
    y1 = jnp.maximum(y1, 0.0)
    keep1 = _keep_half_mask(y1.shape, seed, row_off, salt=1)
    h_ref[...] = jnp.where(keep1, y1 * 2.0, 0.0)  # 1/(1-p) = 2.0 rescale

    # ---- layer 2 ----
    y2 = jnp.dot(h_ref[...].astype(jnp.bfloat16), w2_ref[...],
                 preferred_element_type=jnp.float32)
    y2 = jnp.maximum(y2, 0.0)
    keep2 = _keep_half_mask(y2.shape, seed, row_off, salt=2)
    o_ref[...] = jnp.where(keep2, y2 * 2.0, 0.0).astype(o_ref.dtype)


def _pick_tile_m(m: int) -> int:
    # Whole array if small; otherwise 512 rows (multiple of 8, ~85% of HBM
    # roofline per the tiling measurements, comfortably inside v7x's 64 MiB VMEM
    # with these feature dims even with double buffering).
    return m if m <= 512 else 512


@jax.jit
def prenet_forward(x, w1, w2, seed):
    """Prenet forward: x (B, T, in_dim) f32 -> (B, T, N2) f32.

    w1: (in_dim, N1) bf16, w2: (N1, N2) bf16  (already transposed vs torch's
    nn.Linear (out, in); bias=False).  Dropout is ALWAYS active, matching the
    reference module (training=True).
    """
    B, T, K = x.shape
    M = B * T
    N1 = w1.shape[1]
    N2 = w2.shape[1]
    x2d = x.reshape(M, K)

    tm = _pick_tile_m(M)
    grid = (pl.cdiv(M, tm),)

    out = pl.pallas_call(
        _prenet_fused_kernel,
        out_shape=jax.ShapeDtypeStruct((M, N2), jnp.float32),
        grid_spec=pltpu.PrefetchScalarGridSpec(
            num_scalar_prefetch=1,                      # seed lives in SMEM
            grid=grid,
            in_specs=[
                pl.BlockSpec((tm, K), lambda i, s: (i, 0)),   # x tile (pipelined)
                pl.BlockSpec((K, N1), lambda i, s: (0, 0)),   # w1 (VMEM resident)
                pl.BlockSpec((N1, N2), lambda i, s: (0, 0)),  # w2 (VMEM resident)
            ],
            out_specs=pl.BlockSpec((tm, N2), lambda i, s: (i, 0)),
            scratch_shapes=[pltpu.VMEM((tm, N1), jnp.float32)],  # layer-1 activation
        ),
        compiler_params=pltpu.CompilerParams(
            dimension_semantics=("parallel",),  # shard M-tiles across TCs on v7x
        ),
    )(seed, x2d, w1, w2)
    return out.reshape(B, T, N2)


def make_prenet_weights(key, in_dim, sizes, dtype=jnp.bfloat16):
    """Xavier-uniform init (matches LinearNorm), stored as (in, out) so the
    kernel computes x @ W == torch's x @ W_torch.T (bias=False)."""
    in_sizes = [in_dim] + sizes[:-1]
    weights = []
    for i, (fan_in, fan_out) in enumerate(zip(in_sizes, sizes)):
        k = jax.random.fold_in(key, i)
        limit = float(jnp.sqrt(6.0 / (fan_in + fan_out)))  # gain=1 (linear)
        w = jax.random.uniform(k, (fan_in, fan_out), jnp.float32, -limit, limit)
        weights.append(w.astype(dtype))
    return weights


if __name__ == "__main__":
    key = jax.random.PRNGKey(0)
    k_x, k_w = jax.random.split(key)

    # Small shapes consistent with the module: Prenet(in_dim=32, sizes=[64, 32])
    B, T, in_dim = 2, 8, 32
    sizes = [64, 32]

    x = jax.random.normal(k_x, (B, T, in_dim), dtype=jnp.float32)
    w1, w2 = make_prenet_weights(k_w, in_dim, sizes)
    seed = jnp.array([1234], dtype=jnp.int32)

    out = prenet_forward(x, w1, w2, seed)
    out = jax.block_until_ready(out)

    assert out.shape == (B, T, sizes[-1]), out.shape
    assert out.dtype == jnp.float32
    assert bool(jnp.isfinite(out).all())
    # Dropout + ReLU zero some (but not all) outputs.
    assert bool((out == 0).any()) and bool((out != 0).any())

    print("KERNEL_OK")
</pallas_src>

<mosaic_0001>
module attributes {stable_mosaic.version = 11 : i64} {
  func.func @_prenet_fused_kernel(%arg0: i32, %arg1: memref<1xi32, #tpu.memory_space<smem>>, %arg2: memref<16x32xf32, #tpu.memory_space<vmem>>, %arg3: memref<32x64xbf16, #tpu.memory_space<vmem>>, %arg4: memref<64x32xbf16, #tpu.memory_space<vmem>>, %arg5: memref<16x32xf32, #tpu.memory_space<vmem>>, %arg6: memref<16x64xf32, #tpu.memory_space<vmem>>) attributes {dimension_semantics = [#tpu.dimension_semantics<parallel>], iteration_bounds = array<i64: 1>, scalar_prefetch = 1 : i64, scratch_operands = 1 : i64, tpu.core_type = #tpu.core_type<tc>, window_params = [{transform_indices = @transform_0, window_bounds = array<i64: 16, 32>}, {pipeline_mode = #tpu.pipeline_mode<synchronous>, transform_indices = @transform_1, window_bounds = array<i64: 32, 64>}, {pipeline_mode = #tpu.pipeline_mode<synchronous>, transform_indices = @transform_2, window_bounds = array<i64: 64, 32>}, {transform_indices = @transform_3, window_bounds = array<i64: 16, 32>}]} {
    %c0 = arith.constant 0 : index
    %0 = memref.load %arg1[%c0] : memref<1xi32, #tpu.memory_space<smem>>
    %c16_i32 = arith.constant 16 : i32
    %1 = arith.muli %arg0, %c16_i32 : i32
    %c0_0 = arith.constant 0 : index
    %c0_1 = arith.constant 0 : index
    %2 = vector.load %arg2[%c0_0, %c0_1] : memref<16x32xf32, #tpu.memory_space<vmem>>, vector<16x32xf32>
    %3 = arith.truncf %2 : vector<16x32xf32> to vector<16x32xbf16>
    %c0_2 = arith.constant 0 : index
    %c0_3 = arith.constant 0 : index
    %4 = vector.load %arg3[%c0_2, %c0_3] : memref<32x64xbf16, #tpu.memory_space<vmem>>, vector<32x64xbf16>
    %cst = arith.constant dense<0.000000e+00> : vector<16x64xf32>
    %5 = tpu.matmul %3, %4, %cst {dimension_numbers = #tpu.dot_dimension_numbers<[1], [0], [0], [1], [0, 0, 1, 1], [], []>} : vector<16x32xbf16>, vector<32x64xbf16>, vector<16x64xf32> -> vector<16x64xf32>
    %cst_4 = arith.constant 0.000000e+00 : f32
    %6 = vector.broadcast %cst_4 : f32 to vector<16x64xf32>
    %7 = arith.maximumf %5, %6 : vector<16x64xf32>
    %8 = tpu.iota {dimensions = array<i32: 0>} : vector<16x64xi32>
    %9 = vector.broadcast %1 : i32 to vector<16x64xi32>
    %10 = arith.addi %8, %9 : vector<16x64xi32>
    %11 = tpu.iota {dimensions = array<i32: 1>} : vector<16x64xi32>
    %c-1640531535_i32 = arith.constant -1640531535 : i32
    %12 = vector.broadcast %c-1640531535_i32 : i32 to vector<16x64xi32>
    %13 = arith.muli %10, %12 : vector<16x64xi32>
    %c-2048144777_i32 = arith.constant -2048144777 : i32
    %14 = vector.broadcast %c-2048144777_i32 : i32 to vector<16x64xi32>
    %15 = arith.muli %11, %14 : vector<16x64xi32>
    %16 = arith.addi %13, %15 : vector<16x64xi32>
    %c668265263_i32 = arith.constant 668265263 : i32
    %17 = arith.muli %0, %c668265263_i32 : i32
    %18 = vector.broadcast %17 : i32 to vector<16x64xi32>
    %19 = arith.addi %16, %18 : vector<16x64xi32>
    %c374761393_i32 = arith.constant 374761393 : i32
    %20 = vector.broadcast %c374761393_i32 : i32 to vector<16x64xi32>
    %21 = arith.addi %19, %20 : vector<16x64xi32>
    %c16_i32_5 = arith.constant 16 : i32
    %22 = vector.broadcast %c16_i32_5 : i32 to vector<16x64xi32>
    %23 = arith.shrui %21, %22 : vector<16x64xi32>
    %24 = arith.xori %21, %23 : vector<16x64xi32>
    %c2146121005_i32 = arith.constant 2146121005 : i32
    %25 = vector.broadcast %c2146121005_i32 : i32 to vector<16x64xi32>
    %26 = arith.muli %24, %25 : vector<16x64xi32>
    %c15_i32 = arith.constant 15 : i32
    %27 = vector.broadcast %c15_i32 : i32 to vector<16x64xi32>
    %28 = arith.shrui %26, %27 : vector<16x64xi32>
    %29 = arith.xori %26, %28 : vector<16x64xi32>
    %c-2073254261_i32 = arith.constant -2073254261 : i32
    %30 = vector.broadcast %c-2073254261_i32 : i32 to vector<16x64xi32>
    %31 = arith.muli %29, %30 : vector<16x64xi32>
    %c16_i32_6 = arith.constant 16 : i32
    %32 = vector.broadcast %c16_i32_6 : i32 to vector<16x64xi32>
    %33 = arith.shrui %31, %32 : vector<16x64xi32>
    %34 = arith.xori %31, %33 : vector<16x64xi32>
    %c-2147483648_i32 = arith.constant -2147483648 : i32
    %35 = vector.broadcast %c-2147483648_i32 : i32 to vector<16x64xi32>
    %36 = arith.cmpi ult, %34, %35 : vector<16x64xi32>
    %cst_7 = arith.constant 2.000000e+00 : f32
    %37 = vector.broadcast %cst_7 : f32 to vector<16x64xf32>
    %38 = arith.mulf %7, %37 : vector<16x64xf32>
    %cst_8 = arith.constant 0.000000e+00 : f32
    %39 = vector.broadcast %cst_8 : f32 to vector<16x64xf32>
    %40 = arith.select %36, %38, %39 : vector<16x64xi1>, vector<16x64xf32>
    %c0_9 = arith.constant 0 : index
    %c0_10 = arith.constant 0 : index
    %41 = vector.load %arg6[%c0_9, %c0_10] : memref<16x64xf32, #tpu.memory_space<vmem>>, vector<16x64xf32>
    tpu.vector_store %arg6[%c0_9, %c0_10], %40 {strides = array<i32>} : memref<16x64xf32, #tpu.memory_space<vmem>>, vector<16x64xf32>,
    %c0_11 = arith.constant 0 : index
    %c0_12 = arith.constant 0 : index
    %42 = vector.load %arg6[%c0_11, %c0_12] : memref<16x64xf32, #tpu.memory_space<vmem>>, vector<16x64xf32>
    %43 = arith.truncf %42 : vector<16x64xf32> to vector<16x64xbf16>
    %c0_13 = arith.constant 0 : index
    %c0_14 = arith.constant 0 : index
    %44 = vector.load %arg4[%c0_13, %c0_14] : memref<64x32xbf16, #tpu.memory_space<vmem>>, vector<64x32xbf16>
    %cst_15 = arith.constant dense<0.000000e+00> : vector<16x32xf32>
    %45 = tpu.matmul %43, %44, %cst_15 {dimension_numbers = #tpu.dot_dimension_numbers<[1], [0], [0], [1], [0, 0, 1, 1], [], []>} : vector<16x64xbf16>, vector<64x32xbf16>, vector<16x32xf32> -> vector<16x32xf32>
    %cst_16 = arith.constant 0.000000e+00 : f32
    %46 = vector.broadcast %cst_16 : f32 to vector<16x32xf32>
    %47 = arith.maximumf %45, %46 : vector<16x32xf32>
    %48 = tpu.iota {dimensions = array<i32: 0>} : vector<16x32xi32>
    %49 = vector.broadcast %1 : i32 to vector<16x32xi32>
    %50 = arith.addi %48, %49 : vector<16x32xi32>
    %51 = tpu.iota {dimensions = array<i32: 1>} : vector<16x32xi32>
    %c-1640531535_i32_17 = arith.constant -1640531535 : i32
    %52 = vector.broadcast %c-1640531535_i32_17 : i32 to vector<16x32xi32>
    %53 = arith.muli %50, %52 : vector<16x32xi32>
    %c-2048144777_i32_18 = arith.constant -2048144777 : i32
    %54 = vector.broadcast %c-2048144777_i32_18 : i32 to vector<16x32xi32>
    %55 = arith.muli %51, %54 : vector<16x32xi32>
    %56 = arith.addi %53, %55 : vector<16x32xi32>
    %c668265263_i32_19 = arith.constant 668265263 : i32
    %57 = arith.muli %0, %c668265263_i32_19 : i32
    %58 = vector.broadcast %57 : i32 to vector<16x32xi32>
    %59 = arith.addi %56, %58 : vector<16x32xi32>
    %c749522786_i32 = arith.constant 749522786 : i32
    %60 = vector.broadcast %c749522786_i32 : i32 to vector<16x32xi32>
    %61 = arith.addi %59, %60 : vector<16x32xi32>
    %c16_i32_20 = arith.constant 16 : i32
    %62 = vector.broadcast %c16_i32_20 : i32 to vector<16x32xi32>
    %63 = arith.shrui %61, %62 : vector<16x32xi32>
    %64 = arith.xori %61, %63 : vector<16x32xi32>
    %c2146121005_i32_21 = arith.constant 2146121005 : i32
    %65 = vector.broadcast %c2146121005_i32_21 : i32 to vector<16x32xi32>
    %66 = arith.muli %64, %65 : vector<16x32xi32>
    %c15_i32_22 = arith.constant 15 : i32
    %67 = vector.broadcast %c15_i32_22 : i32 to vector<16x32xi32>
    %68 = arith.shrui %66, %67 : vector<16x32xi32>
    %69 = arith.xori %66, %68 : vector<16x32xi32>
    %c-2073254261_i32_23 = arith.constant -2073254261 : i32
    %70 = vector.broadcast %c-2073254261_i32_23 : i32 to vector<16x32xi32>
    %71 = arith.muli %69, %70 : vector<16x32xi32>
    %c16_i32_24 = arith.constant 16 : i32
    %72 = vector.broadcast %c16_i32_24 : i32 to vector<16x32xi32>
    %73 = arith.shrui %71, %72 : vector<16x32xi32>
    %74 = arith.xori %71, %73 : vector<16x32xi32>
    %c-2147483648_i32_25 = arith.constant -2147483648 : i32
    %75 = vector.broadcast %c-2147483648_i32_25 : i32 to vector<16x32xi32>
    %76 = arith.cmpi ult, %74, %75 : vector<16x32xi32>
    %cst_26 = arith.constant 2.000000e+00 : f32
    %77 = vector.broadcast %cst_26 : f32 to vector<16x32xf32>
    %78 = arith.mulf %47, %77 : vector<16x32xf32>
    %cst_27 = arith.constant 0.000000e+00 : f32
    %79 = vector.broadcast %cst_27 : f32 to vector<16x32xf32>
    %80 = arith.select %76, %78, %79 : vector<16x32xi1>, vector<16x32xf32>
    %c0_28 = arith.constant 0 : index
    %c0_29 = arith.constant 0 : index
    %81 = vector.load %arg5[%c0_28, %c0_29] : memref<16x32xf32, #tpu.memory_space<vmem>>, vector<16x32xf32>
    tpu.vector_store %arg5[%c0_28, %c0_29], %80 {strides = array<i32>} : memref<16x32xf32, #tpu.memory_space<vmem>>, vector<16x32xf32>,
    return
  }
  func.func @transform_0(%arg0: i32, %arg1: memref<1xi32, #tpu.memory_space<smem>>) -> (i32, i32) {
    %c0_i32 = arith.constant 0 : i32
    %c0_i32_0 = arith.constant 0 : i32
    return %arg0, %c0_i32 : i32, i32
  }
  func.func @transform_1(%arg0: i32, %arg1: memref<1xi32, #tpu.memory_space<smem>>) -> (i32, i32) {
    %c0_i32 = arith.constant 0 : i32
    %c0_i32_0 = arith.constant 0 : i32
    %c0_i32_1 = arith.constant 0 : i32
    return %c0_i32, %c0_i32_0 : i32, i32
  }
  func.func @transform_2(%arg0: i32, %arg1: memref<1xi32, #tpu.memory_space<smem>>) -> (i32, i32) {
    %c0_i32 = arith.constant 0 : i32
    %c0_i32_0 = arith.constant 0 : i32
    %c0_i32_1 = arith.constant 0 : i32
    return %c0_i32, %c0_i32_0 : i32, i32
  }
  func.func @transform_3(%arg0: i32, %arg1: memref<1xi32, #tpu.memory_space<smem>>) -> (i32, i32) {
    %c0_i32 = arith.constant 0 : i32
    %c0_i32_0 = arith.constant 0 : i32
    return %arg0, %c0_i32 : i32, i32
  }
}

</mosaic_0001>

<bundles_post_ra>
// kernel: prenet_forward.1
= control target key start
LH: loop header
LB: loop body
LE: loop exit
PB: predicated region body
PF: predicated region fallthrough
CT: control target
= control target key end

     0   :  { %v324_v1 = vmov 0.0   ;;  %vm325_vm0 = vmmov 0   ;;  %s396_s0 = inlined_call_operand.<no memory space> [shape: s32[1], index: 0, kind: input, shape index: {}]   ;;  %s397_s1 = inlined_call_operand.vmem [shape: f32[16,32], index: 1, kind: input, shape index: {}]   ;;  %s398_s2 = inlined_call_operand.vmem [shape: bf16[32,64], index: 2, kind: input, shape index: {}]   ;;  %s399_s3 = inlined_call_operand.vmem [shape: bf16[64,32], index: 3, kind: input, shape index: {}]   ;;  %s400_s4 = inlined_call_operand.hbm [shape: f32[16,32], index: 4, kind: output, shape index: {}]  }
   0x1   :  { %v294_v0 = vld [vmem:[%s398_s2] sm:$0xff]   ;;  %269 = vmatprep.subr.bf16.mxu0 %v324_v1  ;;  %v295_v2 = vld [vmem:[%s398_s2 + $0x8] sm:$0xff]   ;;  %277 = vmatprep.subr.bf16.mxu1 %v324_v1 }
   0x2   :  { %270 = vmatpush3.bf16.msra.mxu0 %v294_v0  ;;  %273 = vmatprep.mubr.msk.bf16.mxu0 %vm325_vm0, %v324_v1  ;;  %v20_v3 = vld [vmem:[%s397_s1] sm:$0xff]  ;;  %v21_v4 = vld [vmem:[%s397_s1 + $0x8] sm:$0xff] }
   0x3   :  { %271 = vmatprep.subr.bf16.mxu0 %v324_v1  ;;  %285 = vmatprep.mubr.msk.bf16.mxu1 %vm325_vm0, %v324_v1  ;;  %v22_v5 = vpack.c.bf16 %v21_v4, %v20_v3 }
   0x4   :  { %10 = vsyncpa [#allocation6], 0  ;;  %vm39_vm1 = vcmask 261120   ;;  %v296_v6 = vld [vmem:[%s399_s3] sm:$0xff]   ;;  %v297_v7 = vld [vmem:[%s399_s3 + $0x8] sm:$0xff]   ;;  %v86_v10 = vlaneseq  ;;  %vm127_vm3 = vcmask 523264  }
   0x5   :  { %278 = vmatpush3.bf16.msra.mxu1 %v296_v6  ;;  %v298_v8 = vld [vmem:[%s399_s3 + $0x10] sm:$0xff]   ;;  %v299_v9 = vld [vmem:[%s399_s3 + $0x18] sm:$0xff]   ;;  %s99_s5 = smul.u32 668265263, %s396_s0  ;;  %s326_s0 = smov [#allocation5]  }
   0x6   :  { %272 = vmatpush3.bf16.msra.mxu0 %v295_v2  ;;  %279 = vmatprep.subr.bf16.mxu1 %v324_v1  ;;  %v87_v11 = vshrl.u32 %v86_v10, 7  ;;  %v93_v12 = vand.u32 127, %v86_v10  ;;  %s242_s3 = sshll.u32 %s326_s0, 4  ;;  %s243_s3 = int_to_ptr.vmem [resolvable:$true] %s242_s3 }
   0x7   :  { %v100_v18 = vstv %s99_s5  ;;  %s300_s6 = scalar_lea.vmem %s243_s3, 256  ;;  %p305_p1 = scmp.lt.s32.totalorder %s243_s3, %s243_s3 }
   0x8   :  { %v88_v13 = vadd.s32 8, %v87_v11  ;;  %v94_v14 = vmul.u32 2654435761, %v87_v11  ;;  %v96_v15 = vmul.u32 2246822519, %v93_v12  ;;  %p301_p0 = scmp.ne.s32.totalorder %s243_s3, %s300_s6  ;;  %p306_p2 = scmp.lt.s32.totalorder %s300_s6, %s300_s6 }
   0x9   :  { %274 = vmatmul.mubr.msk.bf16.vlgmr.msra.gmra.mrb[0].mxu0 %vm39_vm1, %v22_v5  ;;  %280 = vmatpush3.bf16.msra.mxu1 %v297_v7 }
   0xa   :  { %281 = vmatprep.subr.bf16.mxu1 %v324_v1  ;;  %v95_v16 = vmul.u32 2654435761, %v88_v13  ;;  %v97_v17 = vadd.s32 %v96_v15, %v94_v14  ;;  %p307_p3 = por %p306_p2, %p305_p1 }
   0xc   :  { %v98_v19 = vadd.s32 %v96_v15, %v95_v16  ;;  %v101_v20 = vadd.s32 %v100_v18, %v97_v17  ;;  %p308_p4 = pnand %p307_p3, %p301_p0 }
   0xd   :  { %282 = vmatpush3.bf16.msra.mxu1 %v298_v8 }
   0xe   :  { %283 = vmatprep.subr.bf16.mxu1 %v324_v1  ;;  %v102_v21 = vadd.s32 %v100_v18, %v98_v19  ;;  %v103_v22 = vadd.s32 374761393, %v101_v20  ;;  %v211_v53 = vadd.s32 749522786, %v101_v20 }
  0x10   :  { %v104_v23 = vadd.s32 374761393, %v102_v21  ;;  %v105_v24 = vshrl.u32 %v103_v22, 16  ;;  %v212_v54 = vadd.s32 749522786, %v102_v21  ;;  %v213_v55 = vshrl.u32 %v211_v53, 16 }
  0x11   :  { %284 = vmatpush3.bf16.msra.mxu1 %v299_v9 }
  0x12   :  { %v106_v25 = vshrl.u32 %v104_v23, 16  ;;  %v107_v26 = vxor.u32 %v105_v24, %v103_v22  ;;  %v214_v56 = vshrl.u32 %v212_v54, 16  ;;  %v215_v57 = vxor.u32 %v213_v55, %v211_v53 }
  0x14   :  { %v108_v27 = vxor.u32 %v106_v25, %v104_v23  ;;  %v109_v28 = vmul.u32 2146121005, %v107_v26  ;;  %v216_v58 = vxor.u32 %v214_v56, %v212_v54  ;;  %v217_v59 = vmul.u32 2146121005, %v215_v57 }
  0x16   :  { %v110_v29 = vmul.u32 2146121005, %v108_v27  ;;  %v111_v30 = vshrl.u32 %v109_v28, 15  ;;  %v218_v60 = vmul.u32 2146121005, %v216_v58  ;;  %v219_v61 = vshrl.u32 %v217_v59, 15 }
  0x18   :  { %v112_v31 = vshrl.u32 %v110_v29, 15  ;;  %v113_v32 = vxor.u32 %v111_v30, %v109_v28  ;;  %v220_v62 = vshrl.u32 %v218_v60, 15  ;;  %v221_v63 = vxor.u32 %v219_v61, %v217_v59 }
  0x1a   :  { %v114_v33 = vxor.u32 %v112_v31, %v110_v29  ;;  %v115_v34 = vmul.u32 2221713035, %v113_v32  ;;  %v222_v0 = vxor.u32 %v220_v62, %v218_v60  ;;  %v223_v1 = vmul.u32 2221713035, %v221_v63 }
  0x1c   :  { %v116_v35 = vmul.u32 2221713035, %v114_v33  ;;  %v117_v36 = vshrl.u32 %v115_v34, 16  ;;  %v224_v2 = vmul.u32 2221713035, %v222_v0  ;;  %v225_v3 = vshrl.u32 %v223_v1, 16 }
  0x1e   :  { %v118_v37 = vshrl.u32 %v116_v35, 16  ;;  %v119_v38 = vxor.u32 %v117_v36, %v115_v34  ;;  %v226_v4 = vshrl.u32 %v224_v2, 16  ;;  %v227_v5 = vxor.u32 %v225_v3, %v223_v1 }
  0x20   :  { %v120_v40 = vxor.u32 %v118_v37, %v116_v35  ;;  %vm121_vm2 = vcmp.lt.u32.totalorder %v119_v38, 2147483648  ;;  %v228_v7 = vxor.u32 %v226_v4, %v224_v2  ;;  %vm229_vm5 = vcmp.lt.u32.totalorder %v227_v5, 2147483648 }
  0x22   :  { %vm122_vm4 = vcmp.lt.u32.totalorder %v120_v40, 2147483648  ;;  %vm230_vm6 = vcmp.lt.u32.totalorder %v228_v7, 2147483648 }
  0xdc   :  { %v77_v39 = vpop.f32.mrb[0].mxu0 }
  0xdd   :  { %v84_v41 = vmax.f32 %v77_v39, 0.0  ;;  %v275_v42 = vpop.f32.mrb[1].mxu0 }
  0xde   :  { %v80_v43 = vpop.f32.mrb[2].mxu0 }
  0xdf   :  { %v123_v44 = vmul.f32 2.0, %v84_v41  ;;  %v85_v45 = vmax.f32 %v80_v43, 0.0  ;;  %v276_v46 = vpop.f32.mrb[3].mxu0 }
  0xe1   :  { %v125_v47 = vsel %vm121_vm2, %v123_v44, 0.0  ;;  %v124_v48 = vmul.f32 2.0, %v85_v45 }
  0xe2   :  { %128 = vst.msk [vmem:[#allocation2] sm:$0xff] %vm127_vm3, %v125_v47 }
  0xe3   :  { %v126_v49 = vsel %vm122_vm4, %v124_v48, 0.0 }
  0xe4   :  { %129 = vst.msk [vmem:[#allocation2 + $0x8] sm:$0xff] %vm127_vm3, %v126_v49 }
  0xe9   :  { %v130_v50 = vld [vmem:[#allocation2] sm:$0xff] }
  0xeb   :  { %v131_v51 = vld [vmem:[#allocation2 + $0x8] sm:$0xff] }
  0xec   :  { %v132_v52 = vpack.c.bf16 %v131_v51, %v130_v50 }
  0xee   :  { %286 = vmatmul.mubr.msk.bf16.vlgmr.msra.gmra.mrb[0].mxu1 %vm127_vm3, %v132_v52 }
 0x1c1   :  { %v202_v6 = vpop.f32.mrb[0].mxu1 }
 0x1c2   :  { %v209_v8 = vmax.f32 %v202_v6, 0.0  ;;  %v287_v9 = vpop.f32.mrb[1].mxu1 }
 0x1c3   :  { %v205_v10 = vpop.f32.mrb[2].mxu1 }
 0x1c4   :  { %v231_v11 = vmul.f32 2.0, %v209_v8  ;;  %v210_v12 = vmax.f32 %v205_v10, 0.0  ;;  %v288_v13 = vpop.f32.mrb[3].mxu1 }
 0x1c6   :  { %v233_v14 = vsel %vm229_vm5, %v231_v11, 0.0  ;;  %v232_v15 = vmul.f32 2.0, %v210_v12 }
 0x1c7   :  { %235 = vst.msk [vmem:[#allocation5] sm:$0xff] %vm39_vm1, %v233_v14 }
 0x1c8   :  { %v234_v16 = vsel %vm230_vm6, %v232_v15, 0.0 }
 0x1c9   :  { %236 = vst.msk [vmem:[#allocation5 + $0x8] sm:$0xff] %vm39_vm1, %v234_v16 }
 0x1ca   :  { %311 = shalt.err (!%p308_p4)
}
 0x1cb   :  { %s312_s9 = scalar_lea.hbm %s400_s4, 256 }
 0x1cc   :  { %p313_p5 = scmp.ne.s32.totalorder %s400_s4, %s312_s9  ;;  %p316_p6 = scmp.lt.u32.totalorder %s312_s9, %s400_s4 }
 0x1ce   :  { %p318_p7 = pnand %p316_p6, %p313_p5 }
 0x1d0   :  { %321 = shalt.err (!%p318_p7)
}
 0x1d1   :  { %s327_s14 = smov 128   ;;  %s328_s15 = smov 8  }
 0x1d2   :  { %248 = dma.vmem_to_hbm [thread:$0]  %s243_s3, 256, %s400_s4, [#allocation6], %s327_s14, %s327_s14, %s328_s15  }
 0x1d3   :  { %322 = dma.done.wait [#allocation6], 256  }
 0x1d4   :  { %323 = vsyncadd [#allocation6], 4294967040 }
 0x1d5   :  { %252 = vsyncpa [#allocation6], 1 }

</bundles_post_ra>
